<compile_context>
chip_gen: v5e
topology: v5e:2x2
jax: 0.10.0
libtpu: 0.0.40
codegen_flags: <defaults>
</compile_context>

<pallas_src>
import math
import jax
import jax.numpy as jnp
from jax.experimental import pallas as pl
from jax.experimental.pallas import tpu as pltpu


def _round_up(x: int, m: int) -> int:
    return ((x + m - 1) // m) * m


def make_pe_table(d_model: int, max_len: int = 366) -> jnp.ndarray:
    """Deterministic parameter setup, matching the PyTorch __init__ exactly."""
    pe = jnp.zeros((max_len + 1, d_model), dtype=jnp.float32)
    position = jnp.arange(0, max_len, dtype=jnp.float32)[:, None]            # (max_len, 1)
    div_term = jnp.exp(
        jnp.arange(0, d_model, 2, dtype=jnp.float32) * -(math.log(10000.0) / d_model)
    )                                                                        # (d_model//2,)
    pe = pe.at[1:, 0::2].set(jnp.sin(position * div_term))
    pe = pe.at[1:, 1::2].set(jnp.cos(position * div_term))
    return pe


def pack_pe_table(pe: jnp.ndarray):
    """One-time init (register_buffer equivalent): pad rows to a multiple of 128
    and split the f32 table into two bf16 terms (hi + lo == pe to ~2^-16 rel)."""
    n_rows, d_model = pe.shape
    K = _round_up(n_rows, 128)                      # MXU-friendly contraction dim
    pe_pad = jnp.zeros((K, d_model), jnp.float32).at[:n_rows, :].set(pe)
    pe_hi = pe_pad.astype(jnp.bfloat16)
    pe_lo = (pe_pad - pe_hi.astype(jnp.float32)).astype(jnp.bfloat16)
    return pe_hi, pe_lo


def _gather_kernel(idx_ref, hi_ref, lo_ref, o_ref):
    """One grid step: gather T table rows via a one-hot bf16 MXU matmul.

    idx_ref : (T, 1)  int32     -- doy indices for this tile
    hi_ref  : (K, D)  bfloat16  -- high part of the PE table (VMEM resident)
    lo_ref  : (K, D)  bfloat16  -- low  part of the PE table (VMEM resident)
    o_ref   : (T, D)  float32
    """
    T = idx_ref.shape[0]
    K = hi_ref.shape[0]

    idx = idx_ref[...]                                               # (T, 1) int32
    iota = jax.lax.broadcasted_iota(jnp.int32, (T, K), 1)            # lanes = table row id
    onehot = (iota == idx).astype(jnp.bfloat16)                      # single compare; 0/1 exact

    # One-hot row selection on the MXU: exact selection, f32 accumulation.
    # Out-of-range / padding indices produce an all-zero row (== pe[0]).
    acc = jnp.dot(onehot, hi_ref[...], preferred_element_type=jnp.float32)
    acc = acc + jnp.dot(onehot, lo_ref[...], preferred_element_type=jnp.float32)
    o_ref[...] = acc.astype(o_ref.dtype)


def positional_encoding(pe_hi: jnp.ndarray, pe_lo: jnp.ndarray, doy: jnp.ndarray,
                        rows_per_tile: int | None = None) -> jnp.ndarray:
    """Pallas equivalent of `self.pe[doy, :]` using the prebuilt packed table."""
    B, S = doy.shape
    K, d_model = pe_hi.shape
    N = B * S

    # Tile size: multiple of 8 rows.  For larger problems prefer >=2 tiles so the
    # "parallel" grid axis can be split across v7x's two TensorCores.
    MAX_T = 512
    if rows_per_tile is None:
        if N <= 256:
            T = _round_up(max(N, 8), 8)             # tiny: one tile, minimal padding
        elif N <= 2 * MAX_T:
            T = _round_up((N + 1) // 2, 8)          # two tiles -> both TCs on v7x
        else:
            T = MAX_T
    else:
        T = _round_up(max(rows_per_tile, 8), 8)

    N_pad = _round_up(N, T)
    num_tiles = N_pad // T

    # Padding indices are 0 -> pe[0] == zeros; padded rows are sliced off below.
    doy_flat = jnp.zeros((N_pad, 1), jnp.int32).at[:N, 0].set(
        doy.reshape(N).astype(jnp.int32))

    cost = pl.CostEstimate(
        flops=2 * 2 * N_pad * K * d_model,                       # two bf16 matmuls
        transcendentals=0,
        bytes_accessed=N_pad * 4 + 2 * K * d_model * 2 + N_pad * d_model * 4,
    )

    out = pl.pallas_call(
        _gather_kernel,
        out_shape=jax.ShapeDtypeStruct((N_pad, d_model), jnp.float32),
        grid=(num_tiles,),
        in_specs=[
            # Per-tile indices.
            pl.BlockSpec((T, 1), lambda i: (i, 0)),
            # Whole compact table resident in VMEM; constant index_map => DMA'd once.
            pl.BlockSpec((K, d_model), lambda i: (0, 0)),
            pl.BlockSpec((K, d_model), lambda i: (0, 0)),
        ],
        out_specs=pl.BlockSpec((T, d_model), lambda i: (i, 0)),
        compiler_params=pltpu.CompilerParams(
            dimension_semantics=("parallel",),      # disjoint output tiles -> megacore OK
        ),
        cost_estimate=cost,
    )(doy_flat, pe_hi, pe_lo)

    return out[:N].reshape(B, S, d_model)


if __name__ == "__main__":
    d_model = 32
    max_len = 366
    B, S = 2, 8

    pe = make_pe_table(d_model, max_len)
    pe_hi, pe_lo = pack_pe_table(pe)   # one-time init, outside the hot path

    key = jax.random.PRNGKey(0)
    doy = jax.random.randint(key, (B, S), minval=0, maxval=max_len + 1, dtype=jnp.int32)

    out = positional_encoding(pe_hi, pe_lo, doy)
    out = jax.block_until_ready(out)

    # Pure-JAX reference: pe[doy, :]
    ref = pe[doy, :]
    assert out.shape == (B, S, d_model)
    assert out.dtype == jnp.float32
    assert jnp.allclose(out, ref, rtol=1e-5, atol=1e-5), "Pallas gather does not match reference"

    print("KERNEL_OK")
</pallas_src>

<mosaic_0001>
module attributes {stable_mosaic.version = 11 : i64} {
  func.func @_gather_kernel(%arg0: i32, %arg1: memref<16x1xi32, #tpu.memory_space<vmem>>, %arg2: memref<384x32xbf16, #tpu.memory_space<vmem>>, %arg3: memref<384x32xbf16, #tpu.memory_space<vmem>>, %arg4: memref<16x32xf32, #tpu.memory_space<vmem>>) attributes {dimension_semantics = [#tpu.dimension_semantics<parallel>], iteration_bounds = array<i64: 1>, scalar_prefetch = 0 : i64, scratch_operands = 0 : i64, tpu.core_type = #tpu.core_type<tc>, window_params = [{transform_indices = @transform_0, window_bounds = array<i64: 16, 1>}, {pipeline_mode = #tpu.pipeline_mode<synchronous>, transform_indices = @transform_1, window_bounds = array<i64: 384, 32>}, {pipeline_mode = #tpu.pipeline_mode<synchronous>, transform_indices = @transform_2, window_bounds = array<i64: 384, 32>}, {transform_indices = @transform_3, window_bounds = array<i64: 16, 32>}]} {
    %c0 = arith.constant 0 : index
    %c0_0 = arith.constant 0 : index
    %0 = vector.load %arg1[%c0, %c0_0] : memref<16x1xi32, #tpu.memory_space<vmem>>, vector<16x1xi32>
    %1 = tpu.iota {dimensions = array<i32: 1>} : vector<16x384xi32>
    %2 = vector.broadcast %0 : vector<16x1xi32> to vector<16x384xi32>
    %3 = arith.cmpi eq, %1, %2 : vector<16x384xi32>
    %4 = arith.extui %3 : vector<16x384xi1> to vector<16x384xi32>
    %5 = arith.sitofp %4 : vector<16x384xi32> to vector<16x384xf32>
    %6 = arith.truncf %5 : vector<16x384xf32> to vector<16x384xbf16>
    %c0_1 = arith.constant 0 : index
    %c0_2 = arith.constant 0 : index
    %7 = vector.load %arg2[%c0_1, %c0_2] : memref<384x32xbf16, #tpu.memory_space<vmem>>, vector<384x32xbf16>
    %cst = arith.constant dense<0.000000e+00> : vector<16x32xf32>
    %8 = tpu.matmul %6, %7, %cst {dimension_numbers = #tpu.dot_dimension_numbers<[1], [0], [0], [1], [0, 0, 1, 1], [], []>} : vector<16x384xbf16>, vector<384x32xbf16>, vector<16x32xf32> -> vector<16x32xf32>
    %c0_3 = arith.constant 0 : index
    %c0_4 = arith.constant 0 : index
    %9 = vector.load %arg3[%c0_3, %c0_4] : memref<384x32xbf16, #tpu.memory_space<vmem>>, vector<384x32xbf16>
    %cst_5 = arith.constant dense<0.000000e+00> : vector<16x32xf32>
    %10 = tpu.matmul %6, %9, %cst_5 {dimension_numbers = #tpu.dot_dimension_numbers<[1], [0], [0], [1], [0, 0, 1, 1], [], []>} : vector<16x384xbf16>, vector<384x32xbf16>, vector<16x32xf32> -> vector<16x32xf32>
    %11 = arith.addf %8, %10 : vector<16x32xf32>
    %c0_6 = arith.constant 0 : index
    %c0_7 = arith.constant 0 : index
    %12 = vector.load %arg4[%c0_6, %c0_7] : memref<16x32xf32, #tpu.memory_space<vmem>>, vector<16x32xf32>
    tpu.vector_store %arg4[%c0_6, %c0_7], %11 {strides = array<i32>} : memref<16x32xf32, #tpu.memory_space<vmem>>, vector<16x32xf32>,
    return
  }
  func.func @transform_0(%arg0: i32) -> (i32, i32) {
    %c0_i32 = arith.constant 0 : i32
    %c0_i32_0 = arith.constant 0 : i32
    return %arg0, %c0_i32 : i32, i32
  }
  func.func @transform_1(%arg0: i32) -> (i32, i32) {
    %c0_i32 = arith.constant 0 : i32
    %c0_i32_0 = arith.constant 0 : i32
    %c0_i32_1 = arith.constant 0 : i32
    return %c0_i32, %c0_i32_0 : i32, i32
  }
  func.func @transform_2(%arg0: i32) -> (i32, i32) {
    %c0_i32 = arith.constant 0 : i32
    %c0_i32_0 = arith.constant 0 : i32
    %c0_i32_1 = arith.constant 0 : i32
    return %c0_i32, %c0_i32_0 : i32, i32
  }
  func.func @transform_3(%arg0: i32) -> (i32, i32) {
    %c0_i32 = arith.constant 0 : i32
    %c0_i32_0 = arith.constant 0 : i32
    return %arg0, %c0_i32 : i32, i32
  }
}

</mosaic_0001>

<bundles_post_ra>
// kernel: tpu_custom_call.1
= control target key start
LH: loop header
LB: loop body
LE: loop exit
PB: predicated region body
PF: predicated region fallthrough
CT: control target
= control target key end

     0   :  { %v827_v2 = vmov 0   ;;  %s1005_s0 = inlined_call_operand.vmem [shape: s32[16,1], index: 0, kind: input, shape index: {}]   ;;  %s1006_s1 = inlined_call_operand.vmem [shape: bf16[384,32], index: 1, kind: input, shape index: {}]   ;;  %s1007_s2 = inlined_call_operand.vmem [shape: bf16[384,32], index: 2, kind: input, shape index: {}]   ;;  %s1008_s3 = inlined_call_operand.hbm [shape: f32[16,32], index: 3, kind: output, shape index: {}]  }
   0x1   :  { %v15_v0 = vld [vmem:[%s1005_s0] sm:$0xff]  ;;  %v778_v1 = vld [vmem:[%s1007_s2 + $0x38] sm:$0xff]  ;;  %800 = vset.pattern.permute.xlu0 %v827_v2  ;;  %v777_v4 = vld [vmem:[%s1007_s2 + $0x30] sm:$0xff] }
   0x2   :  { %v786_v3 = vld [vmem:[%s1007_s2 + $0x78] sm:$0xff]  ;;  %22 = vperm.xlu0 %800, %v15_v0   ;;  %288 = vmatpush.bf16.msra.mxu0 %v778_v1  ;;  %v785_v5 = vld [vmem:[%s1007_s2 + $0x70] sm:$0xff]  ;;  %v776_v10 = vld [vmem:[%s1007_s2 + $0x28] sm:$0xff] }
   0x3   :  { %302 = vmatpush.bf16.msra.mxu1 %v786_v3  ;;  %v794_v6 = vld [vmem:[%s1007_s2 + $0xb8] sm:$0xff]  ;;  %v793_v8 = vld [vmem:[%s1007_s2 + $0xb0] sm:$0xff]  ;;  %v16_v11 = vld [vmem:[%s1005_s0 + $0x8] sm:$0xff] }
   0x4   :  { %v754_v7 = vld [vmem:[%s1006_s1 + $0x38] sm:$0xff]  ;;  %316 = vmatpush.bf16.msra.mxu2 %v794_v6  ;;  %v753_v9 = vld [vmem:[%s1006_s1 + $0x30] sm:$0xff]  ;;  %v784_v12 = vld [vmem:[%s1007_s2 + $0x68] sm:$0xff] }
   0x5   :  { %474 = vmatpush.bf16.msra.mxu3 %v754_v7  ;;  %v792_v13 = vld [vmem:[%s1007_s2 + $0xa8] sm:$0xff]  ;;  %v775_v15 = vld [vmem:[%s1007_s2 + $0x20] sm:$0xff] }
   0x6   :  { %289 = vmatpush.bf16.msra.mxu0 %v777_v4  ;;  %v752_v14 = vld [vmem:[%s1006_s1 + $0x28] sm:$0xff]  ;;  %v783_v16 = vld [vmem:[%s1007_s2 + $0x60] sm:$0xff] }
   0x7   :  { %303 = vmatpush.bf16.msra.mxu1 %v785_v5 }
   0x8   :  { %317 = vmatpush.bf16.msra.mxu2 %v793_v8 }
   0x9   :  { %475 = vmatpush.bf16.msra.mxu3 %v753_v9 }
   0xa   :  { %25 = vperm.xlu0 %800, %v16_v11   ;;  %290 = vmatpush.bf16.msra.mxu0 %v776_v10 }
   0xb   :  { %304 = vmatpush.bf16.msra.mxu1 %v784_v12 }
   0xc   :  { %8 = vsyncpa [#allocation3], 0  ;;  %318 = vmatpush.bf16.msra.mxu2 %v792_v13  ;;  %v791_v17 = vld [vmem:[%s1007_s2 + $0xa0] sm:$0xff]  ;;  %v774_v19 = vld [vmem:[%s1007_s2 + $0x18] sm:$0xff]  ;;  %v17_v51 = vlaneseq  ;;  %v828_v57 = vmov 1.0|1.0  }
   0xd   :  { %476 = vmatpush.bf16.msra.mxu3 %v752_v14  ;;  %v751_v18 = vld [vmem:[%s1006_s1 + $0x20] sm:$0xff]  ;;  %v782_v20 = vld [vmem:[%s1007_s2 + $0x58] sm:$0xff]  ;;  %v773_v23 = vld [vmem:[%s1007_s2 + $0x10] sm:$0xff]  ;;  %vm516_vm9 = vcmask 261120   ;;  %s525_s30 = sshll.u32 %s1008_s3, 4  ;;  %s830_s4 = smov 128   ;;  %s526_s30 = int_to_ptr.hbm [resolvable:$true] %s525_s30 }
   0xe   :  { %291 = vmatpush.bf16.msra.mxu0 %v775_v15  ;;  %v790_v21 = vld [vmem:[%s1007_s2 + $0x98] sm:$0xff]  ;;  %v781_v24 = vld [vmem:[%s1007_s2 + $0x50] sm:$0xff]  ;;  %v772_v27 = vld [vmem:[%s1007_s2 + $0x8] sm:$0xff]  ;;  %v18_v53 = vand.u32 127, %v17_v51  ;;  %s831_s5 = smov 8  }
   0xf   :  { %305 = vmatpush.bf16.msra.mxu1 %v783_v16  ;;  %v750_v22 = vld [vmem:[%s1006_s1 + $0x18] sm:$0xff]  ;;  %v789_v25 = vld [vmem:[%s1007_s2 + $0x90] sm:$0xff]  ;;  %v780_v28 = vld [vmem:[%s1007_s2 + $0x48] sm:$0xff] }
  0x10   :  { %319 = vmatpush.bf16.msra.mxu2 %v791_v17  ;;  %v749_v26 = vld [vmem:[%s1006_s1 + $0x10] sm:$0xff]  ;;  %v771_v29 = vld [vmem:[%s1007_s2] sm:$0xff]  ;;  %v762_v31 = vld [vmem:[%s1006_s1 + $0x78] sm:$0xff]  ;;  %v19_v54 = vadd.s32 128, %v18_v53  ;;  %v20_v55 = vadd.s32 256, %v18_v53 }
  0x11   :  { %477 = vmatpush.bf16.msra.mxu3 %v751_v18  ;;  %v779_v30 = vld [vmem:[%s1007_s2 + $0x40] sm:$0xff]  ;;  %v770_v32 = vld [vmem:[%s1006_s1 + $0xb8] sm:$0xff]  ;;  %v761_v33 = vld [vmem:[%s1006_s1 + $0x70] sm:$0xff] }
  0x12   :  { %292 = vmatpush.bf16.msra.mxu0 %v774_v19  ;;  %v769_v34 = vld [vmem:[%s1006_s1 + $0xb0] sm:$0xff]  ;;  %v788_v35 = vld [vmem:[%s1007_s2 + $0x88] sm:$0xff]  ;;  %v787_v39 = vld [vmem:[%s1007_s2 + $0x80] sm:$0xff] }
  0x13   :  { %306 = vmatpush.bf16.msra.mxu1 %v782_v20  ;;  %v748_v36 = vld [vmem:[%s1006_s1 + $0x8] sm:$0xff]  ;;  %v747_v40 = vld [vmem:[%s1006_s1] sm:$0xff]  ;;  %v758_v43 = vld [vmem:[%s1006_s1 + $0x58] sm:$0xff] }
  0x14   :  { %320 = vmatpush.bf16.msra.mxu2 %v790_v21  ;;  %v760_v37 = vld [vmem:[%s1006_s1 + $0x68] sm:$0xff]  ;;  %v759_v41 = vld [vmem:[%s1006_s1 + $0x60] sm:$0xff]  ;;  %v766_v44 = vld [vmem:[%s1006_s1 + $0x98] sm:$0xff] }
  0x15   :  { %478 = vmatpush.bf16.msra.mxu3 %v750_v22  ;;  %v768_v38 = vld [vmem:[%s1006_s1 + $0xa8] sm:$0xff]  ;;  %v767_v42 = vld [vmem:[%s1006_s1 + $0xa0] sm:$0xff]  ;;  %v757_v45 = vld [vmem:[%s1006_s1 + $0x50] sm:$0xff] }
  0x16   :  { %293 = vmatpush.bf16.msra.mxu0 %v773_v23  ;;  %v765_v46 = vld [vmem:[%s1006_s1 + $0x90] sm:$0xff]  ;;  %v756_v47 = vld [vmem:[%s1006_s1 + $0x48] sm:$0xff]  ;;  %v755_v49 = vld [vmem:[%s1006_s1 + $0x40] sm:$0xff] }
  0x17   :  { %307 = vmatpush.bf16.msra.mxu1 %v781_v24  ;;  %v764_v48 = vld [vmem:[%s1006_s1 + $0x88] sm:$0xff]  ;;  %v763_v50 = vld [vmem:[%s1006_s1 + $0x80] sm:$0xff]  ;;  %s829_s1 = smov [#allocation2]  }
  0x18   :  { %321 = vmatpush.bf16.msra.mxu2 %v789_v25  ;;  %s523_s27 = sshll.u32 %s829_s1, 4  ;;  %s524_s27 = int_to_ptr.vmem [resolvable:$true] %s523_s27 }
  0x19   :  { %479 = vmatpush.bf16.msra.mxu3 %v749_v26 }
  0x1a   :  { %294 = vmatpush.bf16.msra.mxu0 %v772_v27 }
  0x1b   :  { %308 = vmatpush.bf16.msra.mxu1 %v780_v28 }
  0x1c   :  { %322 = vmatpush.bf16.msra.mxu2 %v788_v35 }
  0x1d   :  { %480 = vmatpush.bf16.msra.mxu3 %v748_v36 }
  0x1e   :  { %295 = vmatpush.bf16.msra.mxu0 %v771_v29 }
  0x1f   :  { %309 = vmatpush.bf16.msra.mxu1 %v779_v30 }
  0x20   :  { %323 = vmatpush.bf16.msra.mxu2 %v787_v39 }
  0x21   :  { %481 = vmatpush.bf16.msra.mxu3 %v747_v40 }
  0x22   :  { %488 = vmatpush.bf16.msrb.mxu0 %v762_v31 }
  0x23   :  { %502 = vmatpush.bf16.msrb.mxu1 %v770_v32 }
  0x26   :  { %489 = vmatpush.bf16.msrb.mxu0 %v761_v33 }
  0x27   :  { %503 = vmatpush.bf16.msrb.mxu1 %v769_v34 }
  0x2a   :  { %490 = vmatpush.bf16.msrb.mxu0 %v760_v37 }
  0x2b   :  { %504 = vmatpush.bf16.msrb.mxu1 %v768_v38 }
  0x2e   :  { %491 = vmatpush.bf16.msrb.mxu0 %v759_v41 }
  0x2f   :  { %505 = vmatpush.bf16.msrb.mxu1 %v767_v42 }
  0x32   :  { %492 = vmatpush.bf16.msrb.mxu0 %v758_v43 }
  0x33   :  { %506 = vmatpush.bf16.msrb.mxu1 %v766_v44 }
  0x36   :  { %493 = vmatpush.bf16.msrb.mxu0 %v757_v45 }
  0x37   :  { %507 = vmatpush.bf16.msrb.mxu1 %v765_v46 }
  0x3a   :  { %494 = vmatpush.bf16.msrb.mxu0 %v756_v47 }
  0x3b   :  { %508 = vmatpush.bf16.msrb.mxu1 %v764_v48 }
  0x3e   :  { %495 = vmatpush.bf16.msrb.mxu0 %v755_v49 }
  0x3f   :  { %509 = vmatpush.bf16.msrb.mxu1 %v763_v50 }
  0x74   :  { %v23_v52 = vpop.permute.xlu0 %22 }
  0x75   :  { %vm27_vm3 = vcmp.eq.s32.totalorder %v18_v53, %v23_v52  ;;  %vm28_vm5 = vcmp.eq.s32.totalorder %v19_v54, %v23_v52  ;;  %vm29_vm7 = vcmp.eq.s32.totalorder %v20_v55, %v23_v52 }
  0x7c   :  { %v26_v56 = vpop.permute.xlu0 %25 }
  0x7d   :  { %vm30_vm0 = vcmp.eq.s32.totalorder %v18_v53, %v26_v56  ;;  %vm31_vm1 = vcmp.eq.s32.totalorder %v19_v54, %v26_v56  ;;  %vm32_vm2 = vcmp.eq.s32.totalorder %v20_v55, %v26_v56 }
  0x7e   :  { %vm639_vm4 = vmpackc.low %vm30_vm0, %vm27_vm3 }
  0x7f   :  { %640 = vmatmul.msk.bf16.vlgmr.msra.gmra.mxu0 %vm639_vm4, %v828_v57  ;;  %vm641_vm6 = vmpackc.low %vm31_vm1, %vm28_vm5  ;;  %742 = vmatmul.msk.bf16.vlgmr.msra.gmra.mxu3 %vm639_vm4, %v828_v57 }
  0x80   :  { %642 = vmatmul.msk.bf16.vlgmr.msra.gmra.mxu1 %vm641_vm6, %v828_v57  ;;  %vm643_vm8 = vmpackc.low %vm32_vm2, %vm29_vm7 }
  0x81   :  { %644 = vmatmul.msk.bf16.vlgmr.msra.gmra.mxu2 %vm643_vm8, %v828_v57 }
  0x8f   :  { %744 = vmatmul.msk.bf16.vlgmr.msrb.gmra.mxu0 %vm641_vm6, %v828_v57 }
  0x90   :  { %746 = vmatmul.msk.bf16.vlgmr.msrb.gmra.mxu1 %vm643_vm8, %v828_v57 }
  0xfc   :  { %v297_v58 = vpop.f32.mrf.mxu0 }
  0xfd   :  { %v311_v59 = vpop.f32.mrf.mxu1 }
  0xfe   :  { %v312_v62 = vadd.f32 %v311_v59, %v297_v58 }
 0x102   :  { %v483_v1 = vpop.f32.mrf.mxu3 }
 0x104   :  { %v325_v60 = vpop.f32.mrf.mxu2  ;;  %v299_v61 = vpop.f32.mrf.mxu0 }
 0x105   :  { %v313_v63 = vpop.f32.mrf.mxu1  ;;  %v326_v0 = vadd.f32 %v325_v60, %v312_v62 }
 0x106   :  { %v314_v5 = vadd.f32 %v313_v63, %v299_v61 }
 0x107   :  { %v484_v2 = vadd.f32 %v483_v1, %v326_v0 }
 0x10a   :  { %v485_v10 = vpop.f32.mrf.mxu3 }
 0x10c   :  { %v327_v3 = vpop.f32.mrf.mxu2  ;;  %v497_v4 = vpop.f32.mrf.mxu0 }
 0x10d   :  { %v498_v6 = vadd.f32 %v497_v4, %v484_v2  ;;  %v511_v7 = vpop.f32.mrf.mxu1  ;;  %v328_v8 = vadd.f32 %v327_v3, %v314_v5 }
 0x10f   :  { %v512_v9 = vadd.f32 %v511_v7, %v498_v6  ;;  %v486_v11 = vadd.f32 %v485_v10, %v328_v8 }
 0x111   :  { %517 = vst.msk [vmem:[#allocation2] sm:$0xff] %vm516_vm9, %v512_v9 }
 0x114   :  { %v499_v12 = vpop.f32.mrf.mxu0 }
 0x115   :  { %v500_v13 = vadd.f32 %v499_v12, %v486_v11  ;;  %v513_v14 = vpop.f32.mrf.mxu1 }
 0x117   :  { %v514_v15 = vadd.f32 %v513_v14, %v500_v13 }
 0x119   :  { %518 = vst.msk [vmem:[#allocation2 + $0x8] sm:$0xff] %vm516_vm9, %v514_v15 }
 0x11a   :  { %531 = dma.vmem_to_hbm [thread:$0]  %s524_s27, 256, %s526_s30, [#allocation3], %s830_s4, %s830_s4, %s831_s5  }
 0x11b   :  { %825 = dma.done.wait [#allocation3], 256  }
 0x11c   :  { %826 = vsyncadd [#allocation3], 4294967040 }
 0x11d   :  { %536 = vsyncpa [#allocation3], 1 }

</bundles_post_ra>
